<compile_context>
chip_gen: v7x
topology: tpu7x:2x2x1
jax: 0.10.0
libtpu: 0.0.40
codegen_flags: <defaults>
</compile_context>

<pallas_src>
import functools

import jax
import jax.numpy as jnp
from jax.experimental import pallas as pl
from jax.experimental.pallas import tpu as pltpu

_MIB = 1024 * 1024


# --------------------------------------------------------------------------
# Kernels
# --------------------------------------------------------------------------
def _kernel_copy(x_ref, out_ref):
    """kernel_size == 1: start and end endpoints are identical."""
    x = x_ref[...]                              # (TB, TL, D)
    d = x.shape[-1]
    out_ref[:, :, :d] = x
    out_ref[:, :, d:] = x


def _kernel_single(x_ref, out_ref, *, shift):
    """Whole sequence in one tile (possibly several batch rows per block)."""
    x = x_ref[...]                              # (TB, L, D)
    tb, rows, d = x.shape

    out_ref[:, :, :d] = x                       # span starts

    if shift >= rows:
        # every end index falls past the sequence: all zeros
        out_ref[:, :, d:] = jnp.zeros_like(x)
    else:
        out_ref[:, : rows - shift, d:] = x[:, shift:, :]
        out_ref[:, rows - shift :, d:] = jnp.zeros((tb, shift, d), x.dtype)


def _kernel_tiled(x_ref, nxt_ref, out_ref, *, shift, tl, seq_len):
    """Tiled sequence axis; 0 < shift <= SB <= tl guaranteed by the wrapper.

    x_ref:   (TB, tl, D)  current sequence tile
    nxt_ref: (TB, SB, D)  first rows of the NEXT tile (clamped at the last one)
    out_ref: (TB, tl, 2D) lane-dense output tile
    """
    l = pl.program_id(1)
    x = x_ref[...]                              # (TB, tl, D)
    d = x.shape[-1]
    base = l * tl

    out_ref[:, :, :d] = x                       # span starts

    # span ends, rows [0, tl - shift): shifted slab from this tile.
    if tl > shift:                              # static python condition
        a = x[:, shift:, :]                     # (TB, tl - shift, D)
        ra = jax.lax.broadcasted_iota(jnp.int32, (tl - shift, 1), 0)
        valid_a = (base + shift + ra) < seq_len
        out_ref[:, : tl - shift, d:] = jnp.where(valid_a, a, jnp.zeros_like(a))

    # span ends, rows [tl - shift, tl): head of the next tile.
    b = nxt_ref[:, :shift, :]                   # (TB, shift, D)
    rb = jax.lax.broadcasted_iota(jnp.int32, (shift, 1), 0)
    valid_b = (base + tl + rb) < seq_len
    out_ref[:, tl - shift :, d:] = jnp.where(valid_b, b, jnp.zeros_like(b))


# --------------------------------------------------------------------------
# Tile selection (chip-aware VMEM budgeting)
# --------------------------------------------------------------------------
def _vmem_budget_bytes():
    """Cap on the double-buffered per-step block footprint."""
    phys = 64 * _MIB                            # v7x has the smallest physical VMEM
    try:
        info_fn = getattr(pltpu, "get_tpu_info", None)
        if info_fn is not None:
            phys = int(info_fn().vmem_capacity_bytes)
    except Exception:
        pass
    # Stay under every generation's scoped-VMEM default (v5e 16 MiB,
    # v6e/v7x 32 MiB) with headroom for Mosaic internal scratch.
    return max(4 * _MIB, min(12 * _MIB, phys // 5))


def _choose_tiles(B, L, D, shift, itemsize, seq_tile=None):
    """Returns (TB, TL, SB); SB is None when no cross-tile halo is needed."""
    sub = {4: 8, 2: 16, 1: 32}.get(itemsize, 8)   # packed-sublane row multiple
    row_bytes = max(1, D * itemsize)
    budget = _vmem_budget_bytes()
    target_out_block = 2 * _MIB                   # ~2 MiB output block per step

    def rup(v, m):
        return ((v + m - 1) // m) * m

    def rdown(v, m):
        return max(m, (v // m) * m)

    # rows allowed by the budget with TB=1 (in + 2x out, double buffered)
    rows_budget = rdown(budget // (6 * row_bytes), sub)

    # ---- sequence tile ----
    if seq_tile is not None:
        TL = min(int(seq_tile), L)
        if TL < L:
            TL = rup(TL, sub)
        TL = min(TL, max(sub, rows_budget), L)    # budget applies to overrides too
    else:
        rows_by_bytes = max(sub, target_out_block // (2 * row_bytes))
        TL = rdown(min(rows_by_bytes, rows_budget), sub)
        if TL >= L:
            TL = L
            # v7x: when B == 1 keep >= 2 sequence tiles so both TCs get work.
            if B == 1 and L >= 2 * sub:
                TL = min(L, rup(pl.cdiv(L, 2), sub))

    SB = None
    if TL < L and shift > 0:
        # halo block: power of two, >= max(shift, sublane multiple), divides TL
        SB = max(sub, pl.next_power_of_2(shift))
        max_rows = (budget // (2 * row_bytes) - SB) // 3
        if SB >= L or max_rows < SB:
            # kernel span ~ sequence length, or halo alone exceeds the budget.
            # TODO(synk): multi-block halo for kernel_size >> budgeted tile rows.
            TL, SB = L, None
        else:
            TL = rdown(min(max(TL, SB), max_rows), SB)
            if TL >= L:
                TL, SB = L, None
    if TL >= L:
        TL, SB = L, None

    # ---- batch tile (only when the whole sequence fits one tile) ----
    TB = 1
    if TL == L:
        rows_target = max(sub, target_out_block // (2 * row_bytes))
        TB = max(1, min(B, rows_target // max(1, L)))
        TB = min(TB, max(1, budget // (6 * L * row_bytes)))
        if B > 1 and TB >= B:                     # keep >= 2 grid points (megacore)
            TB = (B + 1) // 2
    return TB, TL, SB


# --------------------------------------------------------------------------
# Wrapper
# --------------------------------------------------------------------------
def span_endpoints_block(x, kernel_size, *, seq_tile=None):
    """Pallas implementation of SpanEndpointsBlock.forward.

    Args:
      x: (B, L, D) array.
      kernel_size: python int.
      seq_tile: optional override for the sequence tile size (testing/tuning).

    Returns:
      (start_end_rep, span_idx) with shapes (B, L, 2, D) and (L, 2).
    """
    B, L, D = x.shape
    shift = int(kernel_size) - 1
    itemsize = jnp.dtype(x.dtype).itemsize

    TB, TL, SB = _choose_tiles(B, L, D, shift, itemsize, seq_tile=seq_tile)
    assert SB is not None or TL == L or shift == 0
    nb = pl.cdiv(B, TB)
    n_l = pl.cdiv(L, TL)
    grid = (nb, n_l)

    x_spec = pl.BlockSpec((TB, TL, D), lambda b, l: (b, l, 0))
    out_spec = pl.BlockSpec((TB, TL, 2 * D), lambda b, l: (b, l, 0))

    if shift == 0:
        kernel = _kernel_copy
        in_specs = [x_spec]
        operands = (x,)
    elif SB is None:
        kernel = functools.partial(_kernel_single, shift=shift)
        in_specs = [x_spec]
        operands = (x,)
    else:
        blocks_per_tile = TL // SB
        n_sb = pl.cdiv(L, SB)
        nxt_spec = pl.BlockSpec(
            (TB, SB, D),
            lambda b, l: (b, jnp.minimum((l + 1) * blocks_per_tile, n_sb - 1), 0),
        )
        kernel = functools.partial(_kernel_tiled, shift=shift, tl=TL, seq_len=L)
        in_specs = [x_spec, nxt_spec]
        operands = (x, x)          # one operand per BlockSpec (same array twice)

    # Double-buffered per-step footprint -> explicit compiler VMEM limit.
    footprint = 2 * TB * (3 * TL + (SB or 0)) * D * itemsize
    vmem_limit = int(min(32 * _MIB, max(16 * _MIB, footprint + 4 * _MIB)))

    out_flat = pl.pallas_call(
        kernel,
        out_shape=jax.ShapeDtypeStruct((B, L, 2 * D), x.dtype),
        grid_spec=pltpu.PrefetchScalarGridSpec(
            num_scalar_prefetch=0,
            grid=grid,
            in_specs=in_specs,
            out_specs=out_spec,
        ),
        compiler_params=pltpu.CompilerParams(
            dimension_semantics=("parallel", "parallel"),
            vmem_limit_bytes=vmem_limit,
        ),
        cost_estimate=pl.CostEstimate(
            flops=0,
            transcendentals=0,
            bytes_accessed=3 * B * L * D * itemsize,
        ),
    )(*operands)

    # Free, contiguous reshape back to the module's (B, L, 2, D) layout.
    start_end_rep = out_flat.reshape(B, L, 2, D)

    # Index construction is glue (no tensor compute); done in plain JAX.
    idx = jnp.arange(L, dtype=jnp.int32)
    span_idx = jnp.stack([idx, idx + shift], axis=1)       # (L, 2)
    return start_end_rep, span_idx


# --------------------------------------------------------------------------
# Pure-JAX reference mirroring the PyTorch forward
# --------------------------------------------------------------------------
def _reference(x, kernel_size):
    B, L, D = x.shape
    idx = jnp.arange(L, dtype=jnp.int32)
    span_idx = jnp.stack([idx, idx + kernel_size - 1], axis=1)
    x_pad = jnp.pad(x, ((0, 0), (0, kernel_size - 1), (0, 0)))
    gathered = jnp.take(x_pad, span_idx.reshape(-1), axis=1)
    return gathered.reshape(B, L, 2, D), span_idx


if __name__ == "__main__":
    keys = jax.random.split(jax.random.PRNGKey(0), 9)

    def check(x, ks, seq_tile=None, name=""):
        out, idx = span_endpoints_block(x, ks, seq_tile=seq_tile)
        out = jax.block_until_ready(out)
        idx = jax.block_until_ready(idx)
        ref_out, ref_idx = _reference(x, ks)
        assert out.shape == ref_out.shape, f"{name}: shape mismatch"
        assert jnp.array_equal(out, ref_out), f"{name}: endpoint values mismatch"
        assert jnp.array_equal(idx, ref_idx), f"{name}: span_idx mismatch"

    # 1) module-sized shapes, single-tile path
    check(jax.random.normal(keys[0], (2, 8, 32), jnp.float32), 3, name="case1")
    # 2) tiled path: shift crosses tile boundaries
    check(jax.random.normal(keys[1], (2, 32, 32), jnp.float32), 3, seq_tile=8, name="case2")
    # 3) tiled path with a ragged (non-divisible) last tile
    check(jax.random.normal(keys[2], (2, 20, 32), jnp.float32), 4, seq_tile=8, name="case3")
    # 4) bf16: tiled + ragged with 16-row sublane granularity
    check(jax.random.normal(keys[3], (2, 40, 32), jnp.bfloat16), 5, seq_tile=16, name="case4")
    # 5) kernel_size == 1 (start == end)
    check(jax.random.normal(keys[4], (2, 8, 32), jnp.float32), 1, name="case5")
    # 6) kernel_size - 1 >= L (all end-points are zero padding)
    check(jax.random.normal(keys[5], (1, 4, 32), jnp.float32), 6, name="case6")
    # 7) auto tiling with B == 1 (forces >= 2 sequence tiles)
    check(jax.random.normal(keys[6], (1, 64, 32), jnp.float32), 3, name="case7")
    # 8) batch-tiled single-sequence-tile path
    check(jax.random.normal(keys[7], (4, 16, 32), jnp.float32), 3, name="case8")
    # 9) shift == tile rows (end slab entirely from the next-tile halo)
    check(jax.random.normal(keys[8], (2, 32, 32), jnp.float32), 9, seq_tile=8, name="case9")

    print("KERNEL_OK")
</pallas_src>

<mosaic_0001>
module attributes {stable_mosaic.version = 11 : i64} {
  func.func @_kernel_single(%arg0: i32, %arg1: i32, %arg2: memref<1x8x32xf32, #tpu.memory_space<vmem>>, %arg3: memref<1x8x64xf32, #tpu.memory_space<vmem>>) attributes {dimension_semantics = [#tpu.dimension_semantics<parallel>, #tpu.dimension_semantics<parallel>], iteration_bounds = array<i64: 2, 1>, scalar_prefetch = 0 : i64, scratch_operands = 0 : i64, tpu.core_type = #tpu.core_type<tc>, window_params = [{transform_indices = @transform_0, window_bounds = array<i64: 1, 8, 32>}, {transform_indices = @transform_1, window_bounds = array<i64: 1, 8, 64>}]} {
    %c0 = arith.constant 0 : index
    %c0_0 = arith.constant 0 : index
    %c0_1 = arith.constant 0 : index
    %0 = vector.load %arg2[%c0, %c0_0, %c0_1] : memref<1x8x32xf32, #tpu.memory_space<vmem>>, vector<1x8x32xf32>
    %c0_2 = arith.constant 0 : index
    %c0_3 = arith.constant 0 : index
    %c0_4 = arith.constant 0 : index
    %1 = vector.load %arg3[%c0_2, %c0_3, %c0_4] : memref<1x8x64xf32, #tpu.memory_space<vmem>>, vector<1x8x32xf32>
    tpu.vector_store %arg3[%c0_2, %c0_3, %c0_4], %0 {strides = array<i32>} : memref<1x8x64xf32, #tpu.memory_space<vmem>>, vector<1x8x32xf32>,
    %2 = vector.extract_strided_slice %0 {offsets = [0, 2, 0], sizes = [1, 6, 32], strides = [1, 1, 1]} : vector<1x8x32xf32> to vector<1x6x32xf32>
    %c0_5 = arith.constant 0 : index
    %c0_6 = arith.constant 0 : index
    %c32 = arith.constant 32 : index
    %3 = vector.load %arg3[%c0_5, %c0_6, %c32] : memref<1x8x64xf32, #tpu.memory_space<vmem>>, vector<1x6x32xf32>
    tpu.vector_store %arg3[%c0_5, %c0_6, %c32], %2 {strides = array<i32>} : memref<1x8x64xf32, #tpu.memory_space<vmem>>, vector<1x6x32xf32>,
    %cst = arith.constant 0.000000e+00 : f32
    %4 = vector.broadcast %cst : f32 to vector<1x2x32xf32>
    %c0_7 = arith.constant 0 : index
    %c6 = arith.constant 6 : index
    %c32_8 = arith.constant 32 : index
    %5 = vector.load %arg3[%c0_7, %c6, %c32_8] : memref<1x8x64xf32, #tpu.memory_space<vmem>>, vector<1x2x32xf32>
    tpu.vector_store %arg3[%c0_7, %c6, %c32_8], %4 {strides = array<i32>} : memref<1x8x64xf32, #tpu.memory_space<vmem>>, vector<1x2x32xf32>,
    return
  }
  func.func @transform_0(%arg0: i32, %arg1: i32) -> (i32, i32, i32) {
    %c0_i32 = arith.constant 0 : i32
    %c0_i32_0 = arith.constant 0 : i32
    return %arg0, %arg1, %c0_i32 : i32, i32, i32
  }
  func.func @transform_1(%arg0: i32, %arg1: i32) -> (i32, i32, i32) {
    %c0_i32 = arith.constant 0 : i32
    %c0_i32_0 = arith.constant 0 : i32
    return %arg0, %arg1, %c0_i32 : i32, i32, i32
  }
}

</mosaic_0001>

<bundles_post_ra>
// kernel: tpu_custom_call.1
= control target key start
LH: loop header
LB: loop body
LE: loop exit
PB: predicated region body
PF: predicated region fallthrough
CT: control target
= control target key end

     0   :  { %6 = vsyncpa [#allocation3], 0  ;;  %s632_s0 = inlined_call_operand.hbm [shape: f32[2,8,32], index: 0, kind: input, shape index: {}]   ;;  %s633_s1 = inlined_call_operand.hbm [shape: f32[2,8,64], index: 1, kind: output, shape index: {}]  }
   0x1   :  { %8 = vsyncpa [#allocation3 + $0x1], 0 }
   0x2   :  { %9 = vsyncpa [#allocation4], 0 }
   0x3   :  { %11 = vsyncpa [#allocation4 + $0x1], 0  ;;  %s460_s6 = smov 0   ;;  %s462_s7 = smov 0  }
   0x4   :  { %s464_s8 = smov 0   ;;  %s466_s9 = smov 0  }
   0x5   :  { %s468_s10 = smov 0   ;;  %s470_s11 = smov 0  }
   0x6 LB: > { %s255_s12 = sadd.s32 4294967295, %s444_s11   ;;  %s256_s13 = sadd.s32 4294967294, %s444_s11   ;;  %s444_s11 = sphi %s470_s11, %s17_s11   ;;  %s440_s10 = sphi %s468_s10, %s649_s10   ;;  %s436_s9 = sphi %s466_s9, %s648_s9   ;;  %s432_s8 = sphi %s464_s8, %s647_s8   ;;  %s428_s7 = sphi %s462_s7, %s646_s7   ;;  %s424_s6 = sphi %s460_s6, %s645_s6  }
   0x7   : > { %s29_s14 = sadd.s32 1, %s440_s10  ;;  %s38_s15 = sadd.s32 1, %s432_s8 }
   0x8   : > { %p31_p0 = scmp.ge.s32.totalorder %s29_s14, 2  ;;  %p45_p1 = scmp.ne.s32.totalorder %s432_s8, %s428_s7 }
   0x9   : > { %p46_p2 = scmp.eq.s32.totalorder %s444_s11, 0  ;;  %p51_p3 = scmp.ne.s32.totalorder %s428_s7, %s424_s6 }
   0xa   : > { %s651_s14 = smov (%p31_p0, %s29_s14), 0  ;;  %p52_p5 = scmp.eq.s32.totalorder %s255_s12, 0 }
   0xb   : > { %p501_p4 = por %p46_p2, %p45_p1  ;;  %s33_s17 = ssub.s32 %s440_s10, %s651_s14 }
   0xc   : > { %p77_p6 = scmp.eq.s32.totalorder %s255_s12, 1  ;;  %p36_p7 = scmp.eq.s32.totalorder %s33_s17, 0 }
   0xd   : > { %p507_p8 = por %p52_p5, %p51_p3  ;;  %p83_p10 = scmp.eq.s32.totalorder %s256_s13, 1 }
   0xe   : > { %p511_p9 = por %p77_p6, %p45_p1  ;;  %p280_p13 = scmp.lt.s32.totalorder %s444_s11, 2 }
   0xf   : > { %s516_s20 = scalar_select %p36_p7, %s432_s8, %s38_s15  }
  0x10   : > { %s637_s19 = scalar_select %p511_p9, 1, 0 }
  0x11   : > { %p518_p11 = por %p83_p10, %p51_p3  ;;  %s103_s22 = sand.u32 1, %s432_s8  }
  0x12   : > { %s259_s23 = sshll.u32 %s103_s22, 3  ;;  %s260_s24 = sshll.u32 %s440_s10, 7 }
  0x13   : > { %s638_s21 = scalar_select %p518_p11, 1, 0 }
  0x14   : > { %s529_s27 = scalar_lea.hbm %s632_s0, %s260_s24  ;;  %s107_s28 = scalar_lea.vmem [#allocation2], %s259_s23 }
  0x15   : > { %s115_s29 = sshll.u32 %s107_s28, 4  ;;  %p535_p0 = pnand %p280_p13, %p501_p4  ;;  %s531_s29 = int_to_ptr.vmem [resolvable:$true] %s115_s29 }
  0x16   : > { %s104_s2 = scalar_lea.sflag [#allocation3], %s103_s22  ;;  %s332_s3 = scalar_lea.hbm %s529_s27, 128 }
  0x17   : > { %p333_p3 = scmp.ne.s32.totalorder %s529_s27, %s332_s3  ;;  %p334_p5 = pneg %p535_p0 }
  0x18   : > { %s337_s12 = scalar_lea.hbm %s632_s0, 256  ;;  %p338_p4 = scmp.lt.u32.totalorder %s529_s27, %s632_s0 }
  0x19   : > { %p335_p6 = pnand %p334_p5, %p333_p3  ;;  %p339_p10 = scmp.lt.u32.totalorder %s337_s12, %s332_s3 }
  0x1a   : > { %p341_p12 = scmp.lt.u32.totalorder %s332_s3, %s529_s27 }
  0x1b   : > { %p336_p7 = pneg %p335_p6  ;;  %p340_p13 = por %p339_p10, %p338_p4 }
  0x1d   : > { %p342_p1 = por %p341_p12, %p340_p13 }
  0x1f   : > { %p343_p2 = pnand %p342_p1, %p336_p7 }
  0x21   : > { %346 = shalt.err (!%p343_p2)
}
  0x22   : > { %s347_s16 = scalar_lea.vmem %s531_s29, 128  ;;  %s446_s17 = smov [#allocation2]  }
  0x23   : > { %p348_p3 = scmp.ne.s32.totalorder %s531_s29, %s347_s16  ;;  %s352_s22 = sshll.u32 %s446_s17, 4  ;;  %s353_s22 = int_to_ptr.vmem [resolvable:$false] %s352_s22 }
  0x24   : > { %s354_s23 = scalar_lea.vmem %s353_s22, 256  ;;  %p355_p9 = scmp.lt.s32.totalorder %s531_s29, %s353_s22 }
  0x25   : > { %p350_p6 = pnand %p348_p3, %p334_p5  ;;  %p356_p4 = scmp.lt.s32.totalorder %s354_s23, %s347_s16 }
  0x27   : > { %p351_p11 = pneg %p350_p6  ;;  %p357_p10 = por %p356_p4, %p355_p9 }
  0x29   : > { %p358_p12 = pnand %p357_p10, %p351_p11 }
  0x2b   : > { %361 = shalt.err (!%p358_p12)
}
  0x2c   : > { %275 = dma.hbm_to_vmem [thread:$0]  (!%p535_p0), %s529_s27, 128, %s531_s29, %s104_s2  }
  0x2d   : > { %p640_p1 = scmp.lt.s32.totalorder %s444_s11, 3  ;;  %p641_p2 = scmp.ge.s32.totalorder %s444_s11, 1 }
  0x2f   : > { %p121_p5 = pnand %p641_p2, %p640_p1 }
  0x30   : > { %s571_s24 = sand.u32 (!%p121_p5), 1, %s428_s7  }
  0x31   : > { %124 = sbr.rel (%p121_p5) target bundleno = 187 (0xbb), region = 24  ;;  %s262_s25 = sshll.u32 (!%p121_p5), %s571_s24, 3 }
  0x32   : > { %s127_s26 = scalar_lea.sflag (!%p121_p5), [#allocation3], %s571_s24  ;;  %s130_s28 = scalar_lea.vmem (!%p121_p5), [#allocation2], %s262_s25 }
  0x38   : > { %415 = dma.done.wait (%p507_p8), %s127_s26, 128  }
  0x39   : > { %417 = vsyncadd (%p507_p8), %s127_s26, 4294967168  ;;  %vm150_vm0 = vcmask 261120   ;;  %vm158_vm1 = vcmask 517376   ;;  %v149_v0 = vld [vmem:[%s130_s28] sm:$0xff]  ;;  %s148_s27 = scalar_lea.vmem [#allocation5], %s262_s25  ;;  %s447_s29 = smov 32  }
  0x3a   : > { %151 = vst.msk [vmem:[%s148_s27] sm:$0xff] %vm150_vm0, %v149_v0  ;;  %153 = vrot.lane.b32.xlu0 %v149_v0, %s447_s29  ;;  %v448_v1 = vmov 0.0   ;;  %s265_s30 = sshll.u32 %s436_s9, 7  ;;  %s175_s2 = sshll.u32 %s148_s27, 4  ;;  %vm156_vm2 = vcmask 523522   ;;  %s585_s2 = int_to_ptr.vmem [resolvable:$true] %s175_s2 }
  0x3b   : > { %159 = vst.msk [vmem:[%s148_s27 + $0x6] sm:$0x3] %vm158_vm1, %v448_v1  ;;  %s583_s18 = scalar_lea.hbm %s633_s1, %s265_s30  ;;  %s161_s5 = scalar_lea.sflag [#allocation4], %s571_s24 }
  0x3c   : > { %s362_s12 = scalar_lea.vmem %s585_s2, 128  ;;  %p642_p9 = scmp.ne.s32.totalorder %s637_s19, 0 }
  0x3d   : > { %p363_p8 = scmp.ne.s32.totalorder %s585_s2, %s362_s12  ;;  %s449_s9 = smov [#allocation5]  }
  0x3e   : > { %s366_s13 = sshll.u32 %s449_s9, 4  ;;  %s367_s13 = int_to_ptr.vmem [resolvable:$false] %s366_s13 }
  0x3f   : > { %p364_p11 = pnand %p363_p8, %p642_p9  ;;  %s368_s15 = scalar_lea.vmem %s367_s13, 256 }
  0x40   : > { %p369_p7 = scmp.lt.s32.totalorder %s585_s2, %s367_s13  ;;  %p370_p13 = scmp.lt.s32.totalorder %s368_s15, %s362_s12 }
  0x41   : > { %p365_p0 = pneg %p364_p11 }
  0x42   : > { %p371_p3 = por %p370_p13, %p369_p7 }
  0x44   : > { %p372_p6 = pnand %p371_p3, %p365_p0 }
  0xac   : > { %v154_v2 = vpop.permute.xlu0 %153 }
  0xad   : > { %157 = vst.msk [vmem:[%s148_s27 - $0x2] sm:$0xfc] %vm156_vm2, %v154_v2 }
  0xae   : > { %375 = shalt.err (!%p372_p6)
}
  0xaf   : > { %s376_s16 = scalar_lea.hbm %s583_s18, 128  ;;  %s380_s23 = scalar_lea.hbm %s633_s1, 256 }
  0xb0   : > { %p377_p4 = scmp.ne.s32.totalorder %s583_s18, %s376_s16  ;;  %p381_p1 = scmp.lt.u32.totalorder %s583_s18, %s633_s1 }
  0xb1   : > { %p382_p2 = scmp.lt.u32.totalorder %s380_s23, %s376_s16  ;;  %p384_p8 = scmp.lt.u32.totalorder %s376_s16, %s583_s18 }
  0xb2   : > { %p378_p10 = pnand %p377_p4, %p642_p9 }
  0xb3   : > { %p383_p5 = por %p382_p2, %p381_p1 }
  0xb4   : > { %p379_p12 = pneg %p378_p10 }
  0xb5   : > { %p385_p11 = por %p384_p8, %p383_p5 }
  0xb7   : > { %p386_p0 = pnand %p385_p11, %p379_p12 }
  0xb9   : > { %389 = shalt.err (!%p386_p0)
}
  0xba   : > { %270 = dma.vmem_to_hbm [thread:$0]  (%p642_p9), %s585_s2, 128, %s583_s18, %s161_s5  }
  0xbb PF: > { %s187_s26 = sand.u32 1, %s424_s6   ;;  %p643_p7 = scmp.ne.s32.totalorder %s638_s21, 0 }
  0xbc   : > { %p644_p13 = scmp.ge.s32.totalorder %s444_s11, 2  ;;  %s188_s28 = scalar_lea.sflag [#allocation4], %s187_s26 }
  0xbe   : > { %p277_p3 = pnand %p644_p13, %p643_p7 }
  0xc0   : > { %419 = dma.done.wait (!%p277_p3), %s188_s28, 128  }
  0xc1   : > { %421 = vsyncadd (!%p277_p3), %s188_s28, 4294967168  ;;  %s17_s11 = sadd.s32 1, %s444_s11   ;;  %s645_s6 = smov %s428_s7 }
  0xc2   : > { %p14_p6 = scmp.ge.s32.totalorder %s17_s11, 4   ;;  %s646_s7 = smov %s432_s8 }
  0xc3   : > { %s647_s8 = smov %s516_s20  ;;  %s648_s9 = smov %s440_s10 }
  0xc4   : > { %s649_s10 = smov %s651_s14  ;;  %16 = sbr.rel (!%p14_p6) target bundleno = 6 (0x6), region = 69 }
  0xcb   :  { %193 = vsyncpa [#allocation3], 1 }
  0xcc   :  { %195 = vsyncpa [#allocation3 + $0x1], 1 }
  0xcd   :  { %196 = vsyncpa [#allocation4], 1 }
  0xce   :  { %198 = vsyncpa [#allocation4 + $0x1], 1 }

</bundles_post_ra>
